<compile_context>
chip_gen: v6e
topology: v6e:2x2x1
jax: 0.10.0
libtpu: 0.0.40
codegen_flags: <defaults>
</compile_context>

<pallas_src>
import functools

import jax
import jax.numpy as jnp
from jax.experimental import pallas as pl
from jax.experimental.pallas import tpu as pltpu


def _cdiv(a, b):
    return -(-a // b)


def _round_up(a, b):
    return _cdiv(a, b) * b


def _sls_kernel(x_ref, t_ref, flg_ref, o_ref, *, inv_c, hw, tile_lanes, chunk,
                n_classes, hard_labels, need_mask):
    # x_ref : (C, TILE)            logits, classes on sublanes, rows on lanes
    # t_ref : (C, TILE) dense soft targets   OR  (1, TILE) int32 labels
    # flg_ref: (1, TILE)           per-row flag (original dtype)
    # o_ref : (1, 128)             lane-dense partial sum for this tile
    n_chunks = tile_lanes // chunk

    if need_mask:
        col0 = pl.program_id(1) * tile_lanes
        lane_ids = jax.lax.broadcasted_iota(jnp.int32, (1, chunk), 1)
    if hard_labels:
        cls_ids = jax.lax.broadcasted_iota(jnp.int32, (n_classes, chunk), 0)

    acc = jnp.zeros((n_classes, 128), jnp.float32)

    # Static loop: static lane-aligned slices, per-chunk temporaries die at the
    # end of each chunk, only the small (C, 128) accumulator is carried.
    for ci in range(n_chunks):
        off = ci * chunk

        x = x_ref[:, off:off + chunk].astype(jnp.float32)          # (C, chunk)
        flg = flg_ref[:, off:off + chunk].astype(jnp.float32)      # (1, chunk)

        if need_mask:
            valid = (col0 + off + lane_ids) < hw                    # (1, chunk)
            # Zero garbage columns of the overhanging block so the per-column
            # log-softmax stays finite.
            x = jnp.where(valid, x, 0.0)

        # log_softmax over the class (sublane) axis; the explicit row-max
        # subtraction of the PyTorch module is absorbed here.
        xs = x - jnp.max(x, axis=0, keepdims=True)
        lsm = xs - jnp.log(jnp.sum(jnp.exp(xs), axis=0, keepdims=True))

        if hard_labels:
            lbl = t_ref[:, off:off + chunk]                         # (1, chunk)
            tgt = (cls_ids == lbl).astype(jnp.float32)              # (C, chunk)
        else:
            tgt = t_ref[:, off:off + chunk].astype(jnp.float32)     # (C, chunk)

        # Fused weighting:
        #   loss_row = -logpt*(1-flg) - flos*flg = -sum_c lsm*(t*(1-flg)+flg/C)
        w = tgt * (1.0 - flg) + flg * inv_c
        if need_mask:
            w = jnp.where(valid, w, 0.0)
        prod = lsm * w                                              # (C, chunk)

        # Pairwise-tree lane fold of the chunk into a (C, 128) partial.
        parts = [prod[:, k * 128:(k + 1) * 128] for k in range(chunk // 128)]
        while len(parts) > 1:
            nxt = [parts[i] + parts[i + 1] for i in range(0, len(parts) - 1, 2)]
            if len(parts) % 2:
                nxt.append(parts[-1])
            parts = nxt
        acc = acc + parts[0]

    # Class-axis fold before writeback (cuts output bytes by C x).
    o_ref[...] = -jnp.sum(acc, axis=0, keepdims=True)               # (1, 128)


def sls_loss(x, target, flg, *, tile_lanes=None, chunk_lanes=None,
             vmem_limit_bytes=32 * 1024 * 1024):
    """SLSloss forward (matches the PyTorch module's math).

    x      : (N, C, H, W) / (N, C, HW) logits (zero-copy fast path), or
             (rows, C) logits (this path does ONE transpose of x).
    target : - (N, C, H, W) / (N, C, HW) channel-major soft labels (no copy), or
             - (N*HW, C) PyTorch-interface soft labels (one transpose of
               target only; x is untouched), or
             - integer hard labels of total size N*HW (cheapest: one-hot built
               in-kernel, dense target never read from HBM).
    flg    : (N*HW,)-sized flag in {0, 1}; streamed in its original dtype.
    returns: scalar mean loss (float32).
    bf16 x / target are supported; the kernel upcasts to f32 internally.
    """
    # --- canonicalize x to (N, C, HW): classes on sublanes, rows on lanes ---
    if x.ndim >= 3:
        N, C = x.shape[0], x.shape[1]
        HW = 1
        for d in x.shape[2:]:
            HW *= d
        x3 = x.reshape(N, C, HW)                      # free reshape, no copy
    else:
        rows, C = x.shape
        N, HW = 1, rows
        x3 = x.T.reshape(1, C, rows)                  # one HBM copy of x
    M = N * HW

    # --- canonicalize target ---
    hard_labels = bool(jnp.issubdtype(target.dtype, jnp.integer))
    if hard_labels:
        t3 = target.reshape(N, 1, HW).astype(jnp.int32)
    elif target.ndim == 2 and target.shape[0] == M:
        # PyTorch-interface (M, C): one transpose of target (x untouched).
        t3 = target.reshape(N, HW, C).transpose(0, 2, 1)
    else:
        t3 = target.reshape(N, C, HW)                 # channel-major, no copy

    if flg.dtype == jnp.bool_:
        flg = flg.astype(jnp.float32)                 # avoid packed-bool blocks
    flg3 = flg.reshape(N, 1, HW)                      # keep dtype, cast in-kernel

    # --- tiling heuristics ---
    x_bytes = jnp.dtype(x3.dtype).itemsize

    # Chunk: keep per-chunk f32 temporaries (~C*chunk*4 B each) vreg-resident.
    if chunk_lanes is None:
        chunk_lanes = (8192 // max(1, C)) // 128 * 128
    chunk_lanes = max(128, min(2048, (chunk_lanes // 128) * 128))

    # Tile: ~1 MiB of logits per (double-buffered) input, at most 32 chunks.
    if tile_lanes is None:
        cap = (1 << 20) // max(1, C * x_bytes)
        cap = max(chunk_lanes, min(cap, 32 * chunk_lanes))
        tile_lanes = min(cap, _round_up(HW, 128))
    tile_lanes = max(128, (tile_lanes // 128) * 128)

    # v7x megacore: prefer >= 2 parallel grid steps when the data allows it.
    while N * _cdiv(HW, tile_lanes) < 2 and tile_lanes > 128:
        tile_lanes = max(128, _round_up(tile_lanes // 2, 128))

    chunk_lanes = min(chunk_lanes, tile_lanes)
    while tile_lanes % chunk_lanes != 0:
        chunk_lanes -= 128
    if tile_lanes // chunk_lanes > 32:                # bound unrolled code size
        tile_lanes = 32 * chunk_lanes

    grid_j = _cdiv(HW, tile_lanes)
    need_mask = (grid_j * tile_lanes != HW)           # ragged tail -> mask in-kernel
    grid = (N, grid_j)

    kernel = functools.partial(
        _sls_kernel, inv_c=1.0 / C, hw=HW, tile_lanes=tile_lanes,
        chunk=chunk_lanes, n_classes=C, hard_labels=hard_labels,
        need_mask=need_mask)

    t_rows = 1 if hard_labels else C

    partials = pl.pallas_call(
        kernel,
        out_shape=jax.ShapeDtypeStruct((N, grid_j, 1, 128), jnp.float32),
        grid_spec=pltpu.PrefetchScalarGridSpec(
            num_scalar_prefetch=0,
            grid=grid,
            in_specs=[
                pl.BlockSpec((None, C, tile_lanes), lambda n, j: (n, 0, j)),
                pl.BlockSpec((None, t_rows, tile_lanes), lambda n, j: (n, 0, j)),
                pl.BlockSpec((None, 1, tile_lanes), lambda n, j: (n, 0, j)),
            ],
            out_specs=pl.BlockSpec((None, None, 1, 128), lambda n, j: (n, j, 0, 0)),
        ),
        compiler_params=pltpu.CompilerParams(
            dimension_semantics=("parallel", "parallel"),
            vmem_limit_bytes=vmem_limit_bytes,
        ),
    )(x3, t3, flg3)

    # Tiny final reduction + mean in plain JAX.
    return jnp.sum(partials) / jnp.float32(M)


def sls_loss_ref(x_nchw, target_mc, flg):
    """Pure-JAX reference (mirrors the PyTorch module)."""
    N, C = x_nchw.shape[0], x_nchw.shape[1]
    HW = 1
    for d in x_nchw.shape[2:]:
        HW *= d
    M = N * HW
    x = x_nchw.reshape(N, C, HW).transpose(0, 2, 1).reshape(M, C).astype(jnp.float32)
    x = x - jnp.max(x, axis=1, keepdims=True)
    lsm = jax.nn.log_softmax(x, axis=1)
    flos = jnp.sum(lsm, axis=1) / C
    logpt = jnp.sum(lsm * target_mc.reshape(M, C).astype(jnp.float32), axis=1)
    f = flg.reshape(M).astype(jnp.float32)
    loss = -logpt * (1.0 - f) - flos * f
    return jnp.mean(loss)


if __name__ == "__main__":
    key = jax.random.PRNGKey(0)
    k1, k2, k3, k4 = jax.random.split(key, 4)

    # Shapes consistent with the module: NCHW logits, per-row labels + flag.
    N, C, H, W = 2, 4, 16, 16
    M = N * H * W

    x = jax.random.normal(k1, (N, C, H, W), dtype=jnp.float32)
    labels = jax.random.randint(k2, (M,), 0, C)
    target_mc = jax.nn.one_hot(labels, C, dtype=jnp.float32)                  # (M, C)
    target_nchw = target_mc.reshape(N, H * W, C).transpose(0, 2, 1).reshape(N, C, H, W)
    flg = jax.random.bernoulli(k3, 0.3, (M,)).astype(jnp.float32)

    ref = jax.block_until_ready(sls_loss_ref(x, target_mc, flg))
    out_fast = jax.block_until_ready(sls_loss(x, target_nchw, flg))   # channel-major soft targets
    out_compat = jax.block_until_ready(sls_loss(x, target_mc, flg))   # (M, C) soft targets
    out_hard = jax.block_until_ready(sls_loss(x, labels, flg))        # int hard labels
    assert jnp.allclose(out_fast, ref, rtol=1e-5, atol=1e-5), (out_fast, ref)
    assert jnp.allclose(out_compat, ref, rtol=1e-5, atol=1e-5), (out_compat, ref)
    assert jnp.allclose(out_hard, ref, rtol=1e-5, atol=1e-5), (out_hard, ref)

    # Ragged spatial extent (HW not a multiple of 128): exercises the in-kernel
    # tail masking path (no jnp.pad anywhere).
    H2, W2 = 15, 15
    M2 = N * H2 * W2
    x2 = jax.random.normal(k4, (N, C, H2, W2), dtype=jnp.float32)
    labels2 = jax.random.randint(k2, (M2,), 0, C)
    t2_mc = jax.nn.one_hot(labels2, C, dtype=jnp.float32)
    t2_nchw = t2_mc.reshape(N, H2 * W2, C).transpose(0, 2, 1).reshape(N, C, H2, W2)
    flg2 = jax.random.bernoulli(k3, 0.5, (M2,)).astype(jnp.float32)
    ref2 = jax.block_until_ready(sls_loss_ref(x2, t2_mc, flg2))
    out2 = jax.block_until_ready(sls_loss(x2, t2_nchw, flg2))
    out2_hard = jax.block_until_ready(sls_loss(x2, labels2, flg2))
    assert jnp.allclose(out2, ref2, rtol=1e-5, atol=1e-5), (out2, ref2)
    assert jnp.allclose(out2_hard, ref2, rtol=1e-5, atol=1e-5), (out2_hard, ref2)

    print("KERNEL_OK")
</pallas_src>

<mosaic_0001>
module attributes {stable_mosaic.version = 11 : i64} {
  func.func @_sls_kernel(%arg0: i32, %arg1: i32, %arg2: memref<1x4x256xf32, #tpu.memory_space<vmem>>, %arg3: memref<1x4x256xf32, #tpu.memory_space<vmem>>, %arg4: memref<1x1x256xf32, #tpu.memory_space<vmem>>, %arg5: memref<1x1x1x128xf32, #tpu.memory_space<vmem>>) attributes {dimension_semantics = [#tpu.dimension_semantics<parallel>, #tpu.dimension_semantics<parallel>], iteration_bounds = array<i64: 2, 1>, scalar_prefetch = 0 : i64, scratch_operands = 0 : i64, tpu.core_type = #tpu.core_type<tc>, window_params = [{transform_indices = @transform_0, window_bounds = array<i64: 1, 4, 256>}, {transform_indices = @transform_1, window_bounds = array<i64: 1, 4, 256>}, {transform_indices = @transform_2, window_bounds = array<i64: 1, 1, 256>}, {transform_indices = @transform_3, window_bounds = array<i64: 1, 1, 1, 128>}]} {
    %cst = arith.constant 0.000000e+00 : f32
    %0 = vector.broadcast %cst : f32 to vector<4x128xf32>
    %c0 = arith.constant 0 : index
    %c0_0 = arith.constant 0 : index
    %c0_1 = arith.constant 0 : index
    %1 = vector.load %arg2[%c0, %c0_0, %c0_1] : memref<1x4x256xf32, #tpu.memory_space<vmem>>, vector<1x4x256xf32>
    %2 = vector.shape_cast %1 : vector<1x4x256xf32> to vector<4x256xf32>
    %c0_2 = arith.constant 0 : index
    %c0_3 = arith.constant 0 : index
    %c0_4 = arith.constant 0 : index
    %3 = vector.load %arg4[%c0_2, %c0_3, %c0_4] : memref<1x1x256xf32, #tpu.memory_space<vmem>>, vector<1x1x256xf32>
    %4 = vector.shape_cast %3 : vector<1x1x256xf32> to vector<1x256xf32>
    %cst_5 = arith.constant dense<0xFF800000> : vector<256xf32>
    %5 = vector.multi_reduction <maximumf>, %2, %cst_5 [0] : vector<4x256xf32> to vector<256xf32>
    %6 = vector.shape_cast %5 : vector<256xf32> to vector<1x256xf32>
    %7 = vector.broadcast %6 : vector<1x256xf32> to vector<4x256xf32>
    %8 = arith.subf %2, %7 : vector<4x256xf32>
    %9 = math.exp %8 : vector<4x256xf32>
    %cst_6 = arith.constant dense<0.000000e+00> : vector<256xf32>
    %10 = vector.multi_reduction <add>, %9, %cst_6 [0] : vector<4x256xf32> to vector<256xf32>
    %11 = vector.shape_cast %10 : vector<256xf32> to vector<1x256xf32>
    %12 = math.log %11 : vector<1x256xf32>
    %13 = vector.broadcast %12 : vector<1x256xf32> to vector<4x256xf32>
    %14 = arith.subf %8, %13 : vector<4x256xf32>
    %c0_7 = arith.constant 0 : index
    %c0_8 = arith.constant 0 : index
    %c0_9 = arith.constant 0 : index
    %15 = vector.load %arg3[%c0_7, %c0_8, %c0_9] : memref<1x4x256xf32, #tpu.memory_space<vmem>>, vector<1x4x256xf32>
    %16 = vector.shape_cast %15 : vector<1x4x256xf32> to vector<4x256xf32>
    %cst_10 = arith.constant 1.000000e+00 : f32
    %17 = vector.broadcast %cst_10 : f32 to vector<1x256xf32>
    %18 = arith.subf %17, %4 : vector<1x256xf32>
    %19 = vector.broadcast %18 : vector<1x256xf32> to vector<4x256xf32>
    %20 = arith.mulf %16, %19 : vector<4x256xf32>
    %cst_11 = arith.constant 2.500000e-01 : f32
    %21 = vector.broadcast %cst_11 : f32 to vector<1x256xf32>
    %22 = arith.mulf %4, %21 : vector<1x256xf32>
    %23 = vector.broadcast %22 : vector<1x256xf32> to vector<4x256xf32>
    %24 = arith.addf %20, %23 : vector<4x256xf32>
    %25 = arith.mulf %14, %24 : vector<4x256xf32>
    %26 = vector.extract_strided_slice %25 {offsets = [0, 0], sizes = [4, 128], strides = [1, 1]} : vector<4x256xf32> to vector<4x128xf32>
    %27 = vector.extract_strided_slice %25 {offsets = [0, 128], sizes = [4, 128], strides = [1, 1]} : vector<4x256xf32> to vector<4x128xf32>
    %28 = arith.addf %26, %27 : vector<4x128xf32>
    %29 = arith.addf %0, %28 : vector<4x128xf32>
    %cst_12 = arith.constant dense<0.000000e+00> : vector<128xf32>
    %30 = vector.multi_reduction <add>, %29, %cst_12 [0] : vector<4x128xf32> to vector<128xf32>
    %31 = vector.shape_cast %30 : vector<128xf32> to vector<1x128xf32>
    %cst_13 = arith.constant 0.000000e+00 : f32
    %32 = vector.broadcast %cst_13 : f32 to vector<1x128xf32>
    %33 = arith.subf %32, %31 : vector<1x128xf32>
    %c0_14 = arith.constant 0 : index
    %c0_15 = arith.constant 0 : index
    %c0_16 = arith.constant 0 : index
    %c0_17 = arith.constant 0 : index
    %34 = vector.load %arg5[%c0_14, %c0_15, %c0_16, %c0_17] : memref<1x1x1x128xf32, #tpu.memory_space<vmem>>, vector<1x1x1x128xf32>
    %35 = vector.shape_cast %34 : vector<1x1x1x128xf32> to vector<1x128xf32>
    %36 = vector.shape_cast %33 : vector<1x128xf32> to vector<1x1x1x128xf32>
    tpu.vector_store %arg5[%c0_14, %c0_15, %c0_16, %c0_17], %36 {strides = array<i32>} : memref<1x1x1x128xf32, #tpu.memory_space<vmem>>, vector<1x1x1x128xf32>,
    return
  }
  func.func @transform_0(%arg0: i32, %arg1: i32) -> (i32, i32, i32) {
    %c0_i32 = arith.constant 0 : i32
    %c0_i32_0 = arith.constant 0 : i32
    return %arg0, %c0_i32, %arg1 : i32, i32, i32
  }
  func.func @transform_1(%arg0: i32, %arg1: i32) -> (i32, i32, i32) {
    %c0_i32 = arith.constant 0 : i32
    %c0_i32_0 = arith.constant 0 : i32
    return %arg0, %c0_i32, %arg1 : i32, i32, i32
  }
  func.func @transform_2(%arg0: i32, %arg1: i32) -> (i32, i32, i32) {
    %c0_i32 = arith.constant 0 : i32
    %c0_i32_0 = arith.constant 0 : i32
    return %arg0, %c0_i32, %arg1 : i32, i32, i32
  }
  func.func @transform_3(%arg0: i32, %arg1: i32) -> (i32, i32, i32, i32) {
    %c0_i32 = arith.constant 0 : i32
    %c0_i32_0 = arith.constant 0 : i32
    %c0_i32_1 = arith.constant 0 : i32
    return %arg0, %arg1, %c0_i32, %c0_i32_0 : i32, i32, i32, i32
  }
}

</mosaic_0001>

<bundles_post_ra>
// kernel: tpu_custom_call.1
= control target key start
LH: loop header
LB: loop body
LE: loop exit
PB: predicated region body
PF: predicated region fallthrough
CT: control target
= control target key end

     0   :  { %s1015_s0 = inlined_call_operand.hbm [shape: f32[2,4,256], index: 0, kind: input, shape index: {}]   ;;  %s1016_s1 = inlined_call_operand.hbm [shape: f32[2,4,256], index: 1, kind: input, shape index: {}]   ;;  %s1017_s2 = inlined_call_operand.hbm [shape: f32[2,1,256], index: 2, kind: input, shape index: {}]   ;;  %s1018_s3 = inlined_call_operand.hbm [shape: f32[2,1,1,128], index: 3, kind: output, shape index: {}]  }
   0x1   :  { %1020 = sst [smem:[#allocation13_spill]] %s1016_s1 }
   0x2   :  { %8 = vsyncpa [#allocation3], 0 }
   0x3   :  { %10 = vsyncpa [#allocation3 + $0x1], 0 }
   0x4   :  { %11 = vsyncpa [#allocation6], 0 }
   0x5   :  { %13 = vsyncpa [#allocation6 + $0x1], 0 }
   0x6   :  { %14 = vsyncpa [#allocation4], 0 }
   0x7   :  { %16 = vsyncpa [#allocation4 + $0x1], 0  ;;  %s820_s12 = smov 0   ;;  %s822_s13 = smov 0  }
   0x8   :  { %s824_s14 = smov 0   ;;  %s826_s15 = smov 0  }
   0x9   :  { %s828_s16 = smov 0   ;;  %s830_s17 = smov 0  }
   0xa LB: > { %s851_s18 = sadd.s32 4294967295, %s794_s17   ;;  %s525_s19 = sadd.s32 4294967294, %s794_s17   ;;  %s794_s17 = sphi %s830_s17, %s22_s17   ;;  %s790_s16 = sphi %s828_s16, %s1035_s16   ;;  %s786_s15 = sphi %s826_s15, %s1034_s15   ;;  %s782_s14 = sphi %s824_s14, %s1033_s14   ;;  %s778_s13 = sphi %s822_s13, %s1032_s13   ;;  %s774_s12 = sphi %s820_s12, %s1031_s12  }
   0xb   : > { %s34_s20 = sadd.s32 1, %s790_s16  ;;  %s43_s21 = sadd.s32 1, %s782_s14 }
   0xc   : > { %p36_p0 = scmp.ge.s32.totalorder %s34_s20, 2  ;;  %p50_p1 = scmp.ne.s32.totalorder %s782_s14, %s778_s13 }
   0xd   : > { %p51_p2 = scmp.eq.s32.totalorder %s794_s17, 0  ;;  %p56_p3 = scmp.ne.s32.totalorder %s778_s13, %s774_s12 }
   0xe   : > { %s1037_s20 = smov (%p36_p0, %s34_s20), 0  ;;  %p57_p5 = scmp.eq.s32.totalorder %s851_s18, 0 }
   0xf   : > { %1021 = sst [smem:[#allocation12_spill]] %s1037_s20  ;;  %p863_p4 = por %p51_p2, %p50_p1 }
  0x10   : > { %s38_s23 = ssub.s32 %s790_s16, %s1037_s20  ;;  %p138_p6 = scmp.eq.s32.totalorder %s851_s18, 1 }
  0x11   : > { %p41_p7 = scmp.eq.s32.totalorder %s38_s23, 0  ;;  %p871_p8 = por %p57_p5, %p56_p3 }
  0x12   : > { %p875_p9 = por %p138_p6, %p50_p1  ;;  %p144_p10 = scmp.eq.s32.totalorder %s525_s19, 1 }
  0x13   : > { %s880_s26 = scalar_select %p41_p7, %s782_s14, %s43_s21  }
  0x14   : > { %p882_p11 = por %p144_p10, %p56_p3  ;;  %p569_p13 = scmp.lt.s32.totalorder %s794_s17, 2 }
  0x15   : > { %s889_s28 = sand.u32 1, %s782_s14   ;;  %s544_s30 = sshll.u32 %s790_s16, 7 }
  0x16   : > { %s528_s29 = sshll.u32 %s889_s28, 3  ;;  %p895_p0 = pnand %p569_p13, %p863_p4 }
  0x17   : > { %s185_s5 = sand.u32 1, %s794_s17   ;;  %s1027_s1 = sld [smem:[#allocation13_spill]] }
  0x18   : > { %s189_s9 = scalar_lea.vmem [#allocation5], %s528_s29  ;;  %p537_p1 = scmp.ge.s32.totalorder %s794_s17, 1 }
  0x19   : > { %s199_s10 = sshll.u32 %s189_s9, 4  ;;  %p225_p2 = scmp.lt.s32.totalorder %s794_s17, 3  ;;  %s200_s10 = int_to_ptr.vmem [resolvable:$true] %s199_s10 }
  0x1a   : > { %s905_s11 = scalar_lea.sflag [#allocation6], %s185_s5  ;;  %p628_p3 = pneg %p895_p0 }
  0x1b   : > { %s639_s19 = scalar_lea.vmem %s200_s10, 128  ;;  %s796_s21 = smov [#allocation5]  }
  0x1c   : > { %p640_p4 = scmp.ne.s32.totalorder %s200_s10, %s639_s19  ;;  %s644_s22 = sshll.u32 %s796_s21, 4  ;;  %s645_s22 = int_to_ptr.vmem [resolvable:$false] %s644_s22 }
  0x1d   : > { %s197_s8 = scalar_lea.hbm %s1027_s1, %s544_s30  ;;  %s646_s23 = scalar_lea.vmem %s645_s22, 256 }
  0x1e   : > { %p642_p5 = pnand %p640_p4, %p628_p3  ;;  %p647_p7 = scmp.lt.s32.totalorder %s200_s10, %s645_s22 }
  0x1f   : > { %p648_p10 = scmp.lt.s32.totalorder %s646_s23, %s639_s19 }
  0x20   : > { %p643_p6 = pneg %p642_p5 }
  0x21   : > { %p649_p13 = por %p648_p10, %p647_p7 }
  0x23   : > { %p650_p12 = pnand %p649_p13, %p643_p6 }
  0x25   : > { %653 = shalt.err (!%p650_p12)
}
  0x26   : > { %561 = dma.hbm_to_vmem [thread:$0]  (!%p895_p0), %s197_s8, 128, %s200_s10, %s905_s11  }
  0x27   : > { %p919_p4 = pnand %p537_p1, %p225_p2  ;;  %s176_s9 = scalar_lea.hbm %s1015_s0, %s544_s30 }
  0x28   : > { %s168_s19 = scalar_lea.vmem [#allocation2], %s528_s29  ;;  %s534_s22 = sshll.u32 %s889_s28, 1 }
  0x29   : > { %s178_s21 = sshll.u32 %s168_s19, 4  ;;  %s165_s23 = scalar_lea.sflag [#allocation3], %s889_s28  ;;  %s179_s21 = int_to_ptr.vmem [resolvable:$true] %s178_s21 }
  0x2a   : > { %s667_s1 = scalar_lea.vmem %s179_s21, 128  ;;  %s797_s8 = smov [#allocation2]  }
  0x2b   : > { %p668_p12 = scmp.ne.s32.totalorder %s179_s21, %s667_s1  ;;  %s672_s10 = sshll.u32 %s797_s8, 4  ;;  %s673_s10 = int_to_ptr.vmem [resolvable:$false] %s672_s10 }
  0x2c   : > { %s674_s20 = scalar_lea.vmem %s673_s10, 256  ;;  %p675_p1 = scmp.lt.s32.totalorder %s179_s21, %s673_s10 }
  0x2d   : > { %p670_p5 = pnand %p668_p12, %p628_p3  ;;  %p676_p2 = scmp.lt.s32.totalorder %s674_s20, %s667_s1 }
  0x2f   : > { %p671_p6 = pneg %p670_p5  ;;  %p677_p7 = por %p676_p2, %p675_p1 }
  0x31   : > { %p678_p10 = pnand %p677_p7, %p671_p6 }
  0x33   : > { %681 = shalt.err (!%p678_p10)
}
  0x34   : > { %558 = dma.hbm_to_vmem [thread:$0]  (!%p895_p0), %s176_s9, 128, %s179_s21, %s165_s23  }
  0x35   : > { %s546_s28 = sshll.u32 %s790_s16, 5  ;;  %s210_s29 = scalar_lea.vmem [#allocation7], %s534_s22 }
  0x36   : > { %s220_s30 = sshll.u32 %s210_s29, 4  ;;  %s218_s19 = scalar_lea.hbm %s1017_s2, %s546_s28  ;;  %s221_s30 = int_to_ptr.vmem [resolvable:$true] %s220_s30 }
  0x37   : > { %s695_s8 = scalar_lea.vmem %s221_s30, 32  ;;  %s798_s1 = smov [#allocation7]  }
  0x38   : > { %p696_p13 = scmp.ne.s32.totalorder %s221_s30, %s695_s8  ;;  %s700_s20 = sshll.u32 %s798_s1, 4  ;;  %s701_s20 = int_to_ptr.vmem [resolvable:$false] %s700_s20 }
  0x39   : > { %s702_s10 = scalar_lea.vmem %s701_s20, 64  ;;  %p703_p6 = scmp.lt.s32.totalorder %s221_s30, %s701_s20 }
  0x3a   : > { %p698_p12 = pnand %p696_p13, %p628_p3  ;;  %p704_p1 = scmp.lt.s32.totalorder %s702_s10, %s695_s8 }
  0x3c   : > { %p699_p5 = pneg %p698_p12  ;;  %p705_p2 = por %p704_p1, %p703_p6 }
  0x3e   : > { %p706_p7 = pnand %p705_p2, %p699_p5 }
  0x40   : > { %709 = shalt.err (!%p706_p7)
}
  0x41   : > { %564 = dma.hbm_to_vmem [thread:$0]  (!%p895_p0), %s218_s19, 32, %s221_s30, %s905_s11  }
  0x42   : > { %229 = sbr.rel (%p919_p4) target bundleno = 180 (0xb4), region = 32  ;;  %s946_s9 = sand.u32 (!%p919_p4), 1, %s778_s13  }
  0x43   : > { %s538_s21 = sshll.u32 (!%p919_p4), %s946_s9, 3  ;;  %s232_s22 = scalar_lea.sflag (!%p919_p4), [#allocation3], %s946_s9 }
  0x44   : > { %s235_s23 = scalar_lea.vmem (!%p919_p4), [#allocation2], %s538_s21 }
  0x47   : > { %761 = dma.done.wait (%p871_p8), %s232_s22, 128  }
  0x48   : > { %763 = vsyncadd (%p871_p8), %s232_s22, 4294967168  ;;  %s240_s4 = sand.u32 1, %s851_s18   ;;  %s955_s5 = scalar_lea.vmem [#allocation5], %s538_s21 }
  0x49   : > { %s241_s11 = scalar_lea.sflag [#allocation6], %s240_s4 }
  0x4a   : > { %765 = dma.done.wait (%p871_p8), %s241_s11, 160  }
  0x4b   : > { %767 = vsyncadd (%p871_p8), %s241_s11, 4294967136  ;;  %vm293_vm0 = vcmask 1043456   ;;  %v288_v0 = vld [vmem:[%s235_s23] sm:$0xff]  ;;  %s540_s18 = sshll.u32 %s946_s9, 1  ;;  %v344_v30 = vlaneseq  ;;  %v341_v47 = vld [vmem:[%s955_s5] sm:$0xff]  ;;  %s284_s28 = scalar_lea.vmem [#allocation8], %s946_s9 }
  0x4c   : > { %v291_v1 = vcombine.high %v288_v0, %v288_v0  ;;  %v294_v2 = vsel %vm293_vm0, %v288_v0, -inf  ;;  %s253_s24 = scalar_lea.vmem [#allocation7], %s540_s18  ;;  %s397_s29 = sshll.u32 %s284_s28, 4  ;;  %s970_s29 = int_to_ptr.vmem [resolvable:$true] %s397_s29 }
  0x4d   : > { %v295_v3 = vrot.slane %v294_v2, 4  ;;  %v345_v35 = vshrl.u32 %v344_v30, 7  ;;  %v289_v36 = vld [vmem:[%s253_s24] sm:$0x3]  ;;  %s541_s30 = sshll.u32 %s786_s15, 4  ;;  %s384_s8 = scalar_lea.sflag [#allocation4], %s946_s9 }
  0x4e   : > { %v301_v4 = vsel %vm293_vm0, %v291_v1, -inf  ;;  %v342_v38 = vsub.f32 1.0, %v289_v36  ;;  %v355_v43 = vmul.f32 0.25, %v289_v36  ;;  %s395_s19 = scalar_lea.hbm %s1018_s3, %s541_s30  ;;  %s710_s1 = scalar_lea.vmem %s970_s29, 16 }
  0x4f   : > { %v296_v5 = vmax.f32 %v294_v2, %v295_v3  ;;  %v302_v6 = vrot.slane %v301_v4, 4  ;;  %v346_v39 = vsub.s32 0, %v345_v35  ;;  %v350_v40 = vsub.s32 1, %v345_v35  ;;  %p711_p8 = scmp.ne.s32.totalorder %s970_s29, %s710_s1  ;;  %s799_s20 = smov [#allocation8]  }
  0x50   : > { %s714_s15 = sshll.u32 %s799_s20, 4  ;;  %s715_s15 = int_to_ptr.vmem [resolvable:$false] %s714_s15 }
  0x51   : > { %v297_v7 = vrot.slane %v296_v5, 2  ;;  %v303_v8 = vmax.f32 %v301_v4, %v302_v6  ;;  %v347_v41 = vrot.slane %v342_v38, %v346_v39  ;;  %v351_v42 = vrot.slane %v342_v38, %v350_v40  ;;  %p712_p0 = pnand %p711_p8, %p875_p9  ;;  %s716_s10 = scalar_lea.vmem %s715_s15, 32 }
  0x52   : > { %v360_v45 = vrot.slane %v355_v43, %v346_v39  ;;  %v364_v46 = vrot.slane %v355_v43, %v350_v40  ;;  %p717_p4 = scmp.lt.s32.totalorder %s970_s29, %s715_s15  ;;  %p718_p10 = scmp.lt.s32.totalorder %s716_s10, %s710_s1 }
  0x53   : > { %v298_v9 = vmax.f32 %v296_v5, %v297_v7  ;;  %v304_v10 = vrot.slane %v303_v8, 2  ;;  %v352_v44 = vcombine.low %v347_v41, %v351_v42  ;;  %p713_p3 = pneg %p712_p0 }
  0x54   : > { %v365_v51 = vcombine.low %v360_v45, %v364_v46  ;;  %p719_p13 = por %p718_p10, %p717_p4 }
  0x55   : > { %v299_v11 = vrot.slane %v298_v9, 1  ;;  %v305_v12 = vmax.f32 %v303_v8, %v304_v10  ;;  %v354_v50 = vmul.f32 %v352_v44, %v341_v47 }
  0x56   : > { %p720_p12 = pnand %p719_p13, %p713_p3 }
  0x57   : > { %v300_v13 = vmax.f32 %v298_v9, %v299_v11  ;;  %v306_v14 = vrot.slane %v305_v12, 1  ;;  %v367_v55 = vadd.f32 %v365_v51, %v354_v50 }
  0x59   : > { %v307_v15 = vmax.f32 %v305_v12, %v306_v14 }
  0x5b   : > { %v310_v16 = vcombine.low %v300_v13, %v307_v15 }
  0x5d   : > { %v312_v17 = vsub.f32 %v288_v0, %v310_v16 }
  0x5f   : > { %v313_v18 = vmul.f32 1.442695, %v312_v17 }
  0x61   : > { %620 = vpow2.f32 %v313_v18 }
  0x6e   : > { %v621_v19 = vpop.eup %620 }
  0x6f   : > { %v316_v20 = vcombine.high %v621_v19, %v621_v19  ;;  %v318_v21 = vsel %vm293_vm0, %v621_v19, 0.0 }
  0x70   : > { %v319_v22 = vrot.slane %v318_v21, 4 }
  0x71   : > { %v325_v23 = vsel %vm293_vm0, %v316_v20, 0.0 }
  0x72   : > { %v320_v24 = vadd.f32 %v319_v22, %v318_v21  ;;  %v326_v25 = vrot.slane %v325_v23, 4 }
  0x74   : > { %v321_v26 = vrot.slane %v320_v24, 2  ;;  %v327_v27 = vadd.f32 %v326_v25, %v325_v23 }
  0x76   : > { %v322_v28 = vadd.f32 %v321_v26, %v320_v24  ;;  %v328_v29 = vrot.slane %v327_v27, 2 }
  0x78   : > { %v323_v31 = vrot.slane %v322_v28, 1  ;;  %v329_v32 = vadd.f32 %v328_v29, %v327_v27 }
  0x7a   : > { %v324_v33 = vadd.f32 %v323_v31, %v322_v28  ;;  %v330_v34 = vrot.slane %v329_v32, 1 }
  0x7c   : > { %v331_v37 = vadd.f32 %v330_v34, %v329_v32  ;;  %622 = vlog2.f32 %v324_v33 }
  0x7e   : > { %624 = vlog2.f32 %v331_v37 }
  0x89   : > { %v623_v48 = vpop.eup %622 }
  0x8a   : > { %v333_v49 = vmul.f32 0.6931472, %v623_v48 }
  0x8b   : > { %v625_v52 = vpop.eup %624 }
  0x8c   : > { %v335_v53 = vmul.f32 0.6931472, %v625_v52 }
  0x8e   : > { %v338_v54 = vcombine.low %v333_v49, %v335_v53 }
  0x90   : > { %v340_v56 = vsub.f32 %v312_v17, %v338_v54 }
  0x92   : > { %v368_v57 = vmul.f32 %v367_v55, %v340_v56 }
  0x94   : > { %v370_v58 = vrot.slane %v368_v57, 4 }
  0x96   : > { %v372_v59 = vadd.f32 %v370_v58, %v368_v57 }
  0x98   : > { %v374_v60 = vsel %vm293_vm0, %v372_v59, 0.0 }
  0x99   : > { %v375_v61 = vrot.slane %v374_v60, 4 }
  0x9b   : > { %v376_v62 = vadd.f32 %v375_v61, %v374_v60 }
  0x9d   : > { %v377_v63 = vrot.slane %v376_v62, 2 }
  0x9f   : > { %v378_v0 = vadd.f32 %v377_v63, %v376_v62 }
  0xa1   : > { %v379_v1 = vrot.slane %v378_v0, 1 }
  0xa3   : > { %v380_v2 = vadd.f32 %v379_v1, %v378_v0 }
  0xa5   : > { %v381_v3 = vsub.f32 0.0, %v380_v2 }
  0xa7   : > { %382 = vst [vmem:[%s284_s28] sm:$0x1] %v381_v3 }
  0xa8   : > { %723 = shalt.err (!%p720_p12)
}
  0xa9   : > { %s724_s21 = scalar_lea.hbm %s395_s19, 16  ;;  %s728_s23 = scalar_lea.hbm %s1018_s3, 32 }
  0xaa   : > { %p725_p5 = scmp.ne.s32.totalorder %s395_s19, %s724_s21  ;;  %p729_p2 = scmp.lt.s32.totalorder %s395_s19, %s1018_s3 }
  0xab   : > { %p730_p7 = scmp.lt.s32.totalorder %s728_s23, %s724_s21 }
  0xac   : > { %p726_p6 = pnand %p725_p5, %p875_p9 }
  0xad   : > { %p731_p8 = por %p730_p7, %p729_p2 }
  0xae   : > { %p727_p1 = pneg %p726_p6 }
  0xb0   : > { %p732_p0 = pnand %p731_p8, %p727_p1 }
  0xb2   : > { %735 = shalt.err (!%p732_p0)
}
  0xb3   : > { %553 = dma.vmem_to_hbm [thread:$0]  (%p875_p9), %s970_s29, 16, %s395_s19, %s384_s8  }
  0xb4 PF: > { %s409_s5 = sand.u32 1, %s774_s12   ;;  %p1029_p3 = scmp.ge.s32.totalorder %s794_s17, 2 }
  0xb5   : > { %s410_s18 = scalar_lea.sflag [#allocation4], %s409_s5 }
  0xb6   : > { %p566_p4 = pnand %p1029_p3, %p882_p11 }
  0xb8   : > { %p567_p10 = pneg %p566_p4 }
  0xba   : > { %769 = dma.done.wait (%p567_p10), %s410_s18, 16  }
  0xbb   : > { %771 = vsyncadd (%p567_p10), %s410_s18, 4294967280  ;;  %s22_s17 = sadd.s32 1, %s794_s17   ;;  %s1030_s25 = sld [smem:[#allocation12_spill]] }
  0xbc   : > { %p19_p13 = scmp.ge.s32.totalorder %s22_s17, 4   ;;  %s1031_s12 = smov %s778_s13 }
  0xbd   : > { %s1032_s13 = smov %s782_s14  ;;  %s1033_s14 = smov %s880_s26 }
  0xbe   : > { %s1034_s15 = smov %s790_s16  ;;  %21 = sbr.rel (!%p19_p13) target bundleno = 10 (0xa), region = 101 }
  0xc1   : > { %s1035_s16 = smov %s1030_s25 }
  0xc3   :  { %414 = vsyncpa [#allocation3], 1 }
  0xc4   :  { %416 = vsyncpa [#allocation3 + $0x1], 1 }
  0xc5   :  { %417 = vsyncpa [#allocation6], 1 }
  0xc6   :  { %419 = vsyncpa [#allocation6 + $0x1], 1 }
  0xc7   :  { %420 = vsyncpa [#allocation4], 1 }
  0xc8   :  { %422 = vsyncpa [#allocation4 + $0x1], 1 }

</bundles_post_ra>
